<compile_context>
chip_gen: v5e
topology: v5e:2x2
jax: 0.10.0
libtpu: 0.0.40
codegen_flags: <defaults>
</compile_context>

<pallas_src>
import functools

import jax
import jax.numpy as jnp
from jax import lax
from jax.experimental import pallas as pl
from jax.experimental.pallas import tpu as pltpu

NUM_CLASSES = 20
D_IN = 300
D_H1 = 8 * NUM_CLASSES      # 160
D_H2 = 4 * NUM_CLASSES      # 80
D_OUT = NUM_CLASSES         # 20
BN_EPS = 1e-5
_STAT_ROWS = 8              # per-tile stats block: row0=sum, row1=sumsq, rest=0

_MAX_BATCH_TILE = 1024      # >=512-row tiles already sit on the HBM roofline
_FUSED_BATCH_LIMIT = 1024   # batches up to this size run the fused kernel


def _round_up(x, m):
    return ((x + m - 1) // m) * m


def _softsign(h):
    # Divide -> reciprocal.  Exact (approx=False) keeps f32 numerics; the
    # kernel is HBM-bound so the EUP/VALU cost is irrelevant either way.
    return h * pl.reciprocal(1.0 + jnp.abs(h), approx=False)


def _row_mask(h, batch, batch_tile):
    """Zero rows >= batch of the current tile (ragged last tile) for BN stats."""
    row = (pl.program_id(0) * batch_tile
           + lax.broadcasted_iota(jnp.int32, (batch_tile, 1), 0))
    return jnp.where(row < batch, h, 0.0)


def _store_stats(st_ref, hs):
    st_ref[0:1, :] = jnp.sum(hs, axis=0, keepdims=True)
    st_ref[1:2, :] = jnp.sum(hs * hs, axis=0, keepdims=True)
    st_ref[2:, :] = jnp.zeros((_STAT_ROWS - 2, hs.shape[1]), jnp.float32)


# --------------------------------------------------------------------------
# Fused single-tile kernel (whole batch resident in VMEM)
# --------------------------------------------------------------------------
def _fused_kernel(x_ref, w1_ref, g1_ref, be1_ref, w2_ref, g2_ref, be2_ref,
                  w3_ref, b3_ref, o_ref, *, batch):
    inv_n = 1.0 / batch

    def bn(h, g, be):                       # two-pass (cancellation-safe) BN
        mu = jnp.sum(h, axis=0, keepdims=True) * inv_n
        d = h - mu
        var = jnp.sum(d * d, axis=0, keepdims=True) * inv_n
        return d * (g * lax.rsqrt(var + BN_EPS)) + be

    h = jnp.dot(x_ref[...], w1_ref[...], preferred_element_type=jnp.float32)
    h = _softsign(bn(h, g1_ref[...], be1_ref[...]))
    h = jnp.dot(h, w2_ref[...], preferred_element_type=jnp.float32)
    h = _softsign(bn(h, g2_ref[...], be2_ref[...]))
    o = jnp.dot(h, w3_ref[...], preferred_element_type=jnp.float32) + b3_ref[...]
    o_ref[...] = o.astype(o_ref.dtype)


# --------------------------------------------------------------------------
# Batch-tiled 3-pass kernels (one batch tile per grid step)
# --------------------------------------------------------------------------
def _fc1_kernel(x_ref, w1_ref, h1_ref, st_ref, *, batch, batch_tile, ragged):
    h = jnp.dot(x_ref[...], w1_ref[...], preferred_element_type=jnp.float32)
    h1_ref[...] = h.astype(h1_ref.dtype)
    hs = _row_mask(h, batch, batch_tile) if ragged else h
    _store_stats(st_ref, hs)


def _bn1_fc2_kernel(h1_ref, scale_ref, shift_ref, w2_ref, h2_ref, st_ref, *,
                    batch, batch_tile, ragged):
    h = h1_ref[...].astype(jnp.float32) * scale_ref[...] + shift_ref[...]
    h = _softsign(h)
    h2 = jnp.dot(h, w2_ref[...], preferred_element_type=jnp.float32)
    h2_ref[...] = h2.astype(h2_ref.dtype)
    h2s = _row_mask(h2, batch, batch_tile) if ragged else h2
    _store_stats(st_ref, h2s)


def _bn2_fc3_kernel(h2_ref, scale_ref, shift_ref, w3_ref, b3_ref, o_ref):
    h = h2_ref[...].astype(jnp.float32) * scale_ref[...] + shift_ref[...]
    h = _softsign(h)
    o = jnp.dot(h, w3_ref[...], preferred_element_type=jnp.float32) + b3_ref[...]
    o_ref[...] = o.astype(o_ref.dtype)


# --------------------------------------------------------------------------
# Host-side glue
# --------------------------------------------------------------------------
def _bn_affine(stats, gamma, beta, batch):
    """Reduce per-tile (sum, sumsq) partials -> per-column scale/shift."""
    st = stats.reshape(-1, _STAT_ROWS, stats.shape[-1])
    s = jnp.sum(st[:, 0, :], axis=0, keepdims=True)
    q = jnp.sum(st[:, 1, :], axis=0, keepdims=True)
    mean = s / batch
    var = jnp.maximum(q / batch - mean * mean, 0.0)   # biased batch variance
    scale = gamma * lax.rsqrt(var + BN_EPS)
    shift = beta - mean * scale
    return scale, shift


def newsnet_forward(x, params, *, intermediate_dtype=jnp.bfloat16,
                    batch_tile=None, fused_batch_limit=_FUSED_BATCH_LIMIT):
    """NewsNet forward (training-mode BatchNorm; fc1/fc2 biases folded into BN)."""
    (w1, _b1, g1, be1, w2, _b2, g2, be2, w3, b3) = params
    batch = x.shape[0]

    # ----------------- fused single-tile fast path ------------------------
    if batch_tile is None and batch <= fused_batch_limit:
        fs = lambda shp: pl.BlockSpec(shp, lambda i: (0, 0))
        return pl.pallas_call(
            functools.partial(_fused_kernel, batch=batch),
            grid=(1,),
            in_specs=[fs(x.shape), fs(w1.shape), fs(g1.shape), fs(be1.shape),
                      fs(w2.shape), fs(g2.shape), fs(be2.shape),
                      fs(w3.shape), fs(b3.shape)],
            out_specs=fs((batch, D_OUT)),
            out_shape=jax.ShapeDtypeStruct((batch, D_OUT), jnp.float32),
        )(x, w1, g1, be1, w2, g2, be2, w3, b3)

    # ----------------- batch-tiled 3-pass pipeline ------------------------
    cap = batch_tile if batch_tile is not None else _MAX_BATCH_TILE
    n_tiles = pl.cdiv(batch, cap)
    bt = _round_up(min(cap, pl.cdiv(batch, n_tiles)), 8)   # balanced tiles
    n_tiles = pl.cdiv(batch, bt)
    b_pad = n_tiles * bt
    ragged = b_pad != batch   # last tile reads past x; its rows are masked

    cparams = pltpu.CompilerParams(dimension_semantics=("parallel",))
    k1 = functools.partial(_fc1_kernel, batch=batch, batch_tile=bt, ragged=ragged)
    k2 = functools.partial(_bn1_fc2_kernel, batch=batch, batch_tile=bt,
                           ragged=ragged)

    # ---- pass 1: fc1 + bn1 partial stats ---------------------------------
    h1, st1 = pl.pallas_call(
        k1,
        grid=(n_tiles,),
        in_specs=[
            pl.BlockSpec((bt, D_IN), lambda i: (i, 0)),
            pl.BlockSpec((D_IN, D_H1), lambda i: (0, 0)),
        ],
        out_specs=[
            pl.BlockSpec((bt, D_H1), lambda i: (i, 0)),
            pl.BlockSpec((_STAT_ROWS, D_H1), lambda i: (i, 0)),
        ],
        out_shape=[
            jax.ShapeDtypeStruct((b_pad, D_H1), intermediate_dtype),
            jax.ShapeDtypeStruct((n_tiles * _STAT_ROWS, D_H1), jnp.float32),
        ],
        compiler_params=cparams,
    )(x, w1)

    scale1, shift1 = _bn_affine(st1, g1, be1, batch)

    # ---- pass 2: bn1 + softsign + fc2 + bn2 partial stats -----------------
    h2, st2 = pl.pallas_call(
        k2,
        grid=(n_tiles,),
        in_specs=[
            pl.BlockSpec((bt, D_H1), lambda i: (i, 0)),
            pl.BlockSpec((1, D_H1), lambda i: (0, 0)),
            pl.BlockSpec((1, D_H1), lambda i: (0, 0)),
            pl.BlockSpec((D_H1, D_H2), lambda i: (0, 0)),
        ],
        out_specs=[
            pl.BlockSpec((bt, D_H2), lambda i: (i, 0)),
            pl.BlockSpec((_STAT_ROWS, D_H2), lambda i: (i, 0)),
        ],
        out_shape=[
            jax.ShapeDtypeStruct((b_pad, D_H2), intermediate_dtype),
            jax.ShapeDtypeStruct((n_tiles * _STAT_ROWS, D_H2), jnp.float32),
        ],
        compiler_params=cparams,
    )(h1, scale1, shift1, w2)

    scale2, shift2 = _bn_affine(st2, g2, be2, batch)

    # ---- pass 3: bn2 + softsign + fc3 -------------------------------------
    out = pl.pallas_call(
        _bn2_fc3_kernel,
        grid=(n_tiles,),
        in_specs=[
            pl.BlockSpec((bt, D_H2), lambda i: (i, 0)),
            pl.BlockSpec((1, D_H2), lambda i: (0, 0)),
            pl.BlockSpec((1, D_H2), lambda i: (0, 0)),
            pl.BlockSpec((D_H2, D_OUT), lambda i: (0, 0)),
            pl.BlockSpec((1, D_OUT), lambda i: (0, 0)),
        ],
        out_specs=pl.BlockSpec((bt, D_OUT), lambda i: (i, 0)),
        out_shape=jax.ShapeDtypeStruct((b_pad, D_OUT), jnp.float32),
        compiler_params=cparams,
    )(h2, scale2, shift2, w3, b3)

    return out[:batch]


# --------------------------------------------------------------------------
# Params + pure-JAX reference (mirrors the PyTorch module exactly)
# --------------------------------------------------------------------------
def init_params(key):
    ks = jax.random.split(key, 6)

    def linear(kw, kb, fan_in, fan_out):
        bound = 1.0 / jnp.sqrt(jnp.float32(fan_in))
        w = jax.random.uniform(kw, (fan_in, fan_out), jnp.float32, -bound, bound)
        b = jax.random.uniform(kb, (1, fan_out), jnp.float32, -bound, bound)
        return w, b

    w1, b1 = linear(ks[0], ks[1], D_IN, D_H1)
    w2, b2 = linear(ks[2], ks[3], D_H1, D_H2)
    w3, b3 = linear(ks[4], ks[5], D_H2, D_OUT)
    g1 = jnp.ones((1, D_H1), jnp.float32)
    be1 = jnp.zeros((1, D_H1), jnp.float32)
    g2 = jnp.ones((1, D_H2), jnp.float32)
    be2 = jnp.zeros((1, D_H2), jnp.float32)
    return (w1, b1, g1, be1, w2, b2, g2, be2, w3, b3)


def newsnet_reference(x, params):
    (w1, b1, g1, be1, w2, b2, g2, be2, w3, b3) = params

    def bn(h, g, b):
        mu = jnp.mean(h, axis=0, keepdims=True)
        var = jnp.mean((h - mu) * (h - mu), axis=0, keepdims=True)
        return (h - mu) * lax.rsqrt(var + BN_EPS) * g + b

    h = x @ w1 + b1
    h = bn(h, g1, be1)
    h = h / (1.0 + jnp.abs(h))
    h = h @ w2 + b2
    h = bn(h, g2, be2)
    h = h / (1.0 + jnp.abs(h))
    return h @ w3 + b3


if __name__ == "__main__":
    key = jax.random.PRNGKey(0)
    kx1, kx2, kp = jax.random.split(key, 3)
    params = init_params(kp)

    # 1) Small batch -> fused single-kernel path (pure f32), tight check.
    B = 8
    x = jax.random.normal(kx1, (B, D_IN), jnp.float32)
    out = jax.block_until_ready(jax.jit(newsnet_forward)(x, params))
    ref = newsnet_reference(x, params)
    assert out.shape == (B, D_OUT), out.shape
    err = float(jnp.max(jnp.abs(out - ref)))
    assert jnp.allclose(out, ref, atol=2e-4, rtol=2e-4), f"fused err={err}"

    # 2) Tiled 3-pass path (ragged last tile, no host-side padding), f32
    #    intermediates, tight check.
    B2 = 300
    x2 = jax.random.normal(kx2, (B2, D_IN), jnp.float32)
    ref2 = newsnet_reference(x2, params)
    fwd_tiled_f32 = jax.jit(lambda a, p: newsnet_forward(
        a, p, batch_tile=64, intermediate_dtype=jnp.float32))
    out2 = jax.block_until_ready(fwd_tiled_f32(x2, params))
    assert out2.shape == (B2, D_OUT), out2.shape
    err2 = float(jnp.max(jnp.abs(out2 - ref2)))
    assert jnp.allclose(out2, ref2, atol=2e-4, rtol=2e-4), f"tiled f32 err={err2}"

    # 3) Tiled path with bf16 HBM intermediates (production default: ~35% less
    #    HBM traffic).  bf16 rounding of the pre-BN intermediates costs ~1e-2
    #    absolute accuracy, hence the looser tolerance.
    fwd_tiled_bf16 = jax.jit(lambda a, p: newsnet_forward(a, p, batch_tile=64))
    out3 = jax.block_until_ready(fwd_tiled_bf16(x2, params))
    err3 = float(jnp.max(jnp.abs(out3 - ref2)))
    assert jnp.allclose(out3, ref2, atol=1e-1, rtol=1e-1), f"tiled bf16 err={err3}"

    print("KERNEL_OK")
</pallas_src>

<mosaic_0001>
module attributes {stable_mosaic.version = 11 : i64} {
  func.func @_fused_kernel(%arg0: i32, %arg1: memref<8x300xf32, #tpu.memory_space<vmem>>, %arg2: memref<300x160xf32, #tpu.memory_space<vmem>>, %arg3: memref<1x160xf32, #tpu.memory_space<vmem>>, %arg4: memref<1x160xf32, #tpu.memory_space<vmem>>, %arg5: memref<160x80xf32, #tpu.memory_space<vmem>>, %arg6: memref<1x80xf32, #tpu.memory_space<vmem>>, %arg7: memref<1x80xf32, #tpu.memory_space<vmem>>, %arg8: memref<80x20xf32, #tpu.memory_space<vmem>>, %arg9: memref<1x20xf32, #tpu.memory_space<vmem>>, %arg10: memref<8x20xf32, #tpu.memory_space<vmem>>) attributes {dimension_semantics = [#tpu.dimension_semantics<arbitrary>], iteration_bounds = array<i64: 1>, scalar_prefetch = 0 : i64, scratch_operands = 0 : i64, tpu.core_type = #tpu.core_type<tc>, window_params = [{pipeline_mode = #tpu.pipeline_mode<synchronous>, transform_indices = @transform_0, window_bounds = array<i64: 8, 300>}, {pipeline_mode = #tpu.pipeline_mode<synchronous>, transform_indices = @transform_1, window_bounds = array<i64: 300, 160>}, {pipeline_mode = #tpu.pipeline_mode<synchronous>, transform_indices = @transform_2, window_bounds = array<i64: 1, 160>}, {pipeline_mode = #tpu.pipeline_mode<synchronous>, transform_indices = @transform_3, window_bounds = array<i64: 1, 160>}, {pipeline_mode = #tpu.pipeline_mode<synchronous>, transform_indices = @transform_4, window_bounds = array<i64: 160, 80>}, {pipeline_mode = #tpu.pipeline_mode<synchronous>, transform_indices = @transform_5, window_bounds = array<i64: 1, 80>}, {pipeline_mode = #tpu.pipeline_mode<synchronous>, transform_indices = @transform_6, window_bounds = array<i64: 1, 80>}, {pipeline_mode = #tpu.pipeline_mode<synchronous>, transform_indices = @transform_7, window_bounds = array<i64: 80, 20>}, {pipeline_mode = #tpu.pipeline_mode<synchronous>, transform_indices = @transform_8, window_bounds = array<i64: 1, 20>}, {pipeline_mode = #tpu.pipeline_mode<synchronous>, transform_indices = @transform_9, window_bounds = array<i64: 8, 20>}]} {
    %c0 = arith.constant 0 : index
    %c0_0 = arith.constant 0 : index
    %0 = vector.load %arg1[%c0, %c0_0] : memref<8x300xf32, #tpu.memory_space<vmem>>, vector<8x300xf32>
    %c0_1 = arith.constant 0 : index
    %c0_2 = arith.constant 0 : index
    %1 = vector.load %arg2[%c0_1, %c0_2] : memref<300x160xf32, #tpu.memory_space<vmem>>, vector<300x160xf32>
    %cst = arith.constant dense<0.000000e+00> : vector<8x160xf32>
    %2 = tpu.matmul %0, %1, %cst {dimension_numbers = #tpu.dot_dimension_numbers<[1], [0], [0], [1], [0, 0, 1, 1], [], []>} : vector<8x300xf32>, vector<300x160xf32>, vector<8x160xf32> -> vector<8x160xf32>
    %c0_3 = arith.constant 0 : index
    %c0_4 = arith.constant 0 : index
    %3 = vector.load %arg3[%c0_3, %c0_4] : memref<1x160xf32, #tpu.memory_space<vmem>>, vector<1x160xf32>
    %c0_5 = arith.constant 0 : index
    %c0_6 = arith.constant 0 : index
    %4 = vector.load %arg4[%c0_5, %c0_6] : memref<1x160xf32, #tpu.memory_space<vmem>>, vector<1x160xf32>
    %cst_7 = arith.constant dense<0.000000e+00> : vector<160xf32>
    %5 = vector.multi_reduction <add>, %2, %cst_7 [0] : vector<8x160xf32> to vector<160xf32>
    %6 = vector.shape_cast %5 : vector<160xf32> to vector<1x160xf32>
    %cst_8 = arith.constant 1.250000e-01 : f32
    %7 = vector.broadcast %cst_8 : f32 to vector<1x160xf32>
    %8 = arith.mulf %6, %7 : vector<1x160xf32>
    %9 = vector.broadcast %8 : vector<1x160xf32> to vector<8x160xf32>
    %10 = arith.subf %2, %9 : vector<8x160xf32>
    %11 = arith.mulf %10, %10 : vector<8x160xf32>
    %cst_9 = arith.constant dense<0.000000e+00> : vector<160xf32>
    %12 = vector.multi_reduction <add>, %11, %cst_9 [0] : vector<8x160xf32> to vector<160xf32>
    %13 = vector.shape_cast %12 : vector<160xf32> to vector<1x160xf32>
    %cst_10 = arith.constant 1.250000e-01 : f32
    %14 = vector.broadcast %cst_10 : f32 to vector<1x160xf32>
    %15 = arith.mulf %13, %14 : vector<1x160xf32>
    %cst_11 = arith.constant 9.99999974E-6 : f32
    %16 = vector.broadcast %cst_11 : f32 to vector<1x160xf32>
    %17 = arith.addf %15, %16 : vector<1x160xf32>
    %18 = math.rsqrt %17 : vector<1x160xf32>
    %19 = arith.mulf %3, %18 : vector<1x160xf32>
    %20 = vector.broadcast %19 : vector<1x160xf32> to vector<8x160xf32>
    %21 = arith.mulf %10, %20 : vector<8x160xf32>
    %22 = vector.broadcast %4 : vector<1x160xf32> to vector<8x160xf32>
    %23 = arith.addf %21, %22 : vector<8x160xf32>
    %24 = math.absf %23 : vector<8x160xf32>
    %cst_12 = arith.constant 1.000000e+00 : f32
    %25 = vector.broadcast %cst_12 : f32 to vector<8x160xf32>
    %26 = arith.addf %25, %24 : vector<8x160xf32>
    %27 = tpu.reciprocal %26 : vector<8x160xf32> -> vector<8x160xf32>
    %28 = arith.mulf %23, %27 : vector<8x160xf32>
    %c0_13 = arith.constant 0 : index
    %c0_14 = arith.constant 0 : index
    %29 = vector.load %arg5[%c0_13, %c0_14] : memref<160x80xf32, #tpu.memory_space<vmem>>, vector<160x80xf32>
    %cst_15 = arith.constant dense<0.000000e+00> : vector<8x80xf32>
    %30 = tpu.matmul %28, %29, %cst_15 {dimension_numbers = #tpu.dot_dimension_numbers<[1], [0], [0], [1], [0, 0, 1, 1], [], []>} : vector<8x160xf32>, vector<160x80xf32>, vector<8x80xf32> -> vector<8x80xf32>
    %c0_16 = arith.constant 0 : index
    %c0_17 = arith.constant 0 : index
    %31 = vector.load %arg6[%c0_16, %c0_17] : memref<1x80xf32, #tpu.memory_space<vmem>>, vector<1x80xf32>
    %c0_18 = arith.constant 0 : index
    %c0_19 = arith.constant 0 : index
    %32 = vector.load %arg7[%c0_18, %c0_19] : memref<1x80xf32, #tpu.memory_space<vmem>>, vector<1x80xf32>
    %cst_20 = arith.constant dense<0.000000e+00> : vector<80xf32>
    %33 = vector.multi_reduction <add>, %30, %cst_20 [0] : vector<8x80xf32> to vector<80xf32>
    %34 = vector.shape_cast %33 : vector<80xf32> to vector<1x80xf32>
    %cst_21 = arith.constant 1.250000e-01 : f32
    %35 = vector.broadcast %cst_21 : f32 to vector<1x80xf32>
    %36 = arith.mulf %34, %35 : vector<1x80xf32>
    %37 = vector.broadcast %36 : vector<1x80xf32> to vector<8x80xf32>
    %38 = arith.subf %30, %37 : vector<8x80xf32>
    %39 = arith.mulf %38, %38 : vector<8x80xf32>
    %cst_22 = arith.constant dense<0.000000e+00> : vector<80xf32>
    %40 = vector.multi_reduction <add>, %39, %cst_22 [0] : vector<8x80xf32> to vector<80xf32>
    %41 = vector.shape_cast %40 : vector<80xf32> to vector<1x80xf32>
    %cst_23 = arith.constant 1.250000e-01 : f32
    %42 = vector.broadcast %cst_23 : f32 to vector<1x80xf32>
    %43 = arith.mulf %41, %42 : vector<1x80xf32>
    %cst_24 = arith.constant 9.99999974E-6 : f32
    %44 = vector.broadcast %cst_24 : f32 to vector<1x80xf32>
    %45 = arith.addf %43, %44 : vector<1x80xf32>
    %46 = math.rsqrt %45 : vector<1x80xf32>
    %47 = arith.mulf %31, %46 : vector<1x80xf32>
    %48 = vector.broadcast %47 : vector<1x80xf32> to vector<8x80xf32>
    %49 = arith.mulf %38, %48 : vector<8x80xf32>
    %50 = vector.broadcast %32 : vector<1x80xf32> to vector<8x80xf32>
    %51 = arith.addf %49, %50 : vector<8x80xf32>
    %52 = math.absf %51 : vector<8x80xf32>
    %cst_25 = arith.constant 1.000000e+00 : f32
    %53 = vector.broadcast %cst_25 : f32 to vector<8x80xf32>
    %54 = arith.addf %53, %52 : vector<8x80xf32>
    %55 = tpu.reciprocal %54 : vector<8x80xf32> -> vector<8x80xf32>
    %56 = arith.mulf %51, %55 : vector<8x80xf32>
    %c0_26 = arith.constant 0 : index
    %c0_27 = arith.constant 0 : index
    %57 = vector.load %arg8[%c0_26, %c0_27] : memref<80x20xf32, #tpu.memory_space<vmem>>, vector<80x20xf32>
    %cst_28 = arith.constant dense<0.000000e+00> : vector<8x20xf32>
    %58 = tpu.matmul %56, %57, %cst_28 {dimension_numbers = #tpu.dot_dimension_numbers<[1], [0], [0], [1], [0, 0, 1, 1], [], []>} : vector<8x80xf32>, vector<80x20xf32>, vector<8x20xf32> -> vector<8x20xf32>
    %c0_29 = arith.constant 0 : index
    %c0_30 = arith.constant 0 : index
    %59 = vector.load %arg9[%c0_29, %c0_30] : memref<1x20xf32, #tpu.memory_space<vmem>>, vector<1x20xf32>
    %60 = vector.broadcast %59 : vector<1x20xf32> to vector<8x20xf32>
    %61 = arith.addf %58, %60 : vector<8x20xf32>
    %c0_31 = arith.constant 0 : index
    %c0_32 = arith.constant 0 : index
    %62 = vector.load %arg10[%c0_31, %c0_32] : memref<8x20xf32, #tpu.memory_space<vmem>>, vector<8x20xf32>
    tpu.vector_store %arg10[%c0_31, %c0_32], %61 {strides = array<i32>} : memref<8x20xf32, #tpu.memory_space<vmem>>, vector<8x20xf32>,
    return
  }
  func.func @transform_0(%arg0: i32) -> (i32, i32) {
    %c0_i32 = arith.constant 0 : i32
    %c0_i32_0 = arith.constant 0 : i32
    %c0_i32_1 = arith.constant 0 : i32
    return %c0_i32, %c0_i32_0 : i32, i32
  }
  func.func @transform_1(%arg0: i32) -> (i32, i32) {
    %c0_i32 = arith.constant 0 : i32
    %c0_i32_0 = arith.constant 0 : i32
    %c0_i32_1 = arith.constant 0 : i32
    return %c0_i32, %c0_i32_0 : i32, i32
  }
  func.func @transform_2(%arg0: i32) -> (i32, i32) {
    %c0_i32 = arith.constant 0 : i32
    %c0_i32_0 = arith.constant 0 : i32
    %c0_i32_1 = arith.constant 0 : i32
    return %c0_i32, %c0_i32_0 : i32, i32
  }
  func.func @transform_3(%arg0: i32) -> (i32, i32) {
    %c0_i32 = arith.constant 0 : i32
    %c0_i32_0 = arith.constant 0 : i32
    %c0_i32_1 = arith.constant 0 : i32
    return %c0_i32, %c0_i32_0 : i32, i32
  }
  func.func @transform_4(%arg0: i32) -> (i32, i32) {
    %c0_i32 = arith.constant 0 : i32
    %c0_i32_0 = arith.constant 0 : i32
    %c0_i32_1 = arith.constant 0 : i32
    return %c0_i32, %c0_i32_0 : i32, i32
  }
  func.func @transform_5(%arg0: i32) -> (i32, i32) {
    %c0_i32 = arith.constant 0 : i32
    %c0_i32_0 = arith.constant 0 : i32
    %c0_i32_1 = arith.constant 0 : i32
    return %c0_i32, %c0_i32_0 : i32, i32
  }
  func.func @transform_6(%arg0: i32) -> (i32, i32) {
    %c0_i32 = arith.constant 0 : i32
    %c0_i32_0 = arith.constant 0 : i32
    %c0_i32_1 = arith.constant 0 : i32
    return %c0_i32, %c0_i32_0 : i32, i32
  }
  func.func @transform_7(%arg0: i32) -> (i32, i32) {
    %c0_i32 = arith.constant 0 : i32
    %c0_i32_0 = arith.constant 0 : i32
    %c0_i32_1 = arith.constant 0 : i32
    return %c0_i32, %c0_i32_0 : i32, i32
  }
  func.func @transform_8(%arg0: i32) -> (i32, i32) {
    %c0_i32 = arith.constant 0 : i32
    %c0_i32_0 = arith.constant 0 : i32
    %c0_i32_1 = arith.constant 0 : i32
    return %c0_i32, %c0_i32_0 : i32, i32
  }
  func.func @transform_9(%arg0: i32) -> (i32, i32) {
    %c0_i32 = arith.constant 0 : i32
    %c0_i32_0 = arith.constant 0 : i32
    %c0_i32_1 = arith.constant 0 : i32
    return %c0_i32, %c0_i32_0 : i32, i32
  }
}

</mosaic_0001>

<bundles_post_ra>
// kernel: newsnet_forward.1
= control target key start
LH: loop header
LB: loop body
LE: loop exit
PB: predicated region body
PF: predicated region fallthrough
CT: control target
= control target key end

     0   :  { %vm116_vm0 = vcmask 1043456   ;;  %vm112_vm1 = vcmask 359424   ;;  %s1005_s0 = inlined_call_operand.vmem [shape: f32[8,300], index: 0, kind: input, shape index: {}]   ;;  %s1006_s1 = inlined_call_operand.vmem [shape: f32[300,160], index: 1, kind: input, shape index: {}]   ;;  %s1007_s2 = inlined_call_operand.vmem [shape: f32[1,160], index: 2, kind: input, shape index: {}]   ;;  %s1008_s3 = inlined_call_operand.vmem [shape: f32[1,160], index: 3, kind: input, shape index: {}]   ;;  %s1009_s4 = inlined_call_operand.vmem [shape: f32[160,80], index: 4, kind: input, shape index: {}]   ;;  %s1010_s5 = inlined_call_operand.vmem [shape: f32[1,80], index: 5, kind: input, shape index: {}]   ;;  %s1011_s6 = inlined_call_operand.vmem [shape: f32[1,80], index: 6, kind: input, shape index: {}]   ;;  %s1012_s7 = inlined_call_operand.vmem [shape: f32[80,20], index: 7, kind: input, shape index: {}]   ;;  %s1013_s8 = inlined_call_operand.vmem [shape: f32[1,20], index: 8, kind: input, shape index: {}]   ;;  %s1014_s9 = inlined_call_operand.hbm [shape: f32[8,20], index: 9, kind: output, shape index: {}]  }
   0x1   :  { %v66_v0 = vld [vmem:[%s1006_s1 + $0xf0] sm:$0xff]  ;;  %v64_v3 = vld [vmem:[%s1006_s1 + $0xe0] sm:$0xff]  ;;  %v67_v14 = vld [vmem:[%s1006_s1 + $0xf8] sm:$0xff] }
   0x2   :  { %v98_v1 = vld [vmem:[%s1006_s1 + $0x1f0] sm:$0xff]  ;;  %123 = vmatpush.msra.mxu0 %v66_v0  ;;  %v96_v4 = vld [vmem:[%s1006_s1 + $0x1e0] sm:$0xff]  ;;  %v65_v16 = vld [vmem:[%s1006_s1 + $0xe8] sm:$0xff]  ;;  %183 = vmatpush.msra.mxu3 %v67_v14 }
   0x3   :  { %v110_v2 = vld [vmem:[%s1006_s1 + $0x250] sm:$0xf]  ;;  %143 = vmatpush.msra.mxu1 %v98_v1  ;;  %v108_v5 = vld [vmem:[%s1006_s1 + $0x240] sm:$0xff]  ;;  %v63_v20 = vld [vmem:[%s1006_s1 + $0xd8] sm:$0xff] }
   0x4   :  { %533 = vmatpush.msk.msra.mxu2 %vm116_vm0, %v110_v2  ;;  %v62_v6 = vld [vmem:[%s1006_s1 + $0xd0] sm:$0xff]  ;;  %124 = vmatpush.msra.mxu0 %v64_v3  ;;  %v60_v9 = vld [vmem:[%s1006_s1 + $0xc0] sm:$0xff]  ;;  %v99_v21 = vld [vmem:[%s1006_s1 + $0x1f8] sm:$0xff] }
   0x5   :  { %v94_v7 = vld [vmem:[%s1006_s1 + $0x1d0] sm:$0xff]  ;;  %144 = vmatpush.msra.mxu1 %v96_v4  ;;  %v92_v10 = vld [vmem:[%s1006_s1 + $0x1c0] sm:$0xff]  ;;  %184 = vmatpush.msra.mxu3 %v65_v16  ;;  %v61_v24 = vld [vmem:[%s1006_s1 + $0xc8] sm:$0xff] }
   0x6   :  { %v106_v8 = vld [vmem:[%s1006_s1 + $0x230] sm:$0xff]  ;;  %174 = vmatpush.msra.mxu2 %v108_v5  ;;  %125 = vmatpush.msra.mxu0 %v62_v6  ;;  %v104_v11 = vld [vmem:[%s1006_s1 + $0x220] sm:$0xff]  ;;  %v97_v25 = vld [vmem:[%s1006_s1 + $0x1e8] sm:$0xff] }
   0x7   :  { %145 = vmatpush.msra.mxu1 %v94_v7  ;;  %v58_v12 = vld [vmem:[%s1006_s1 + $0xb0] sm:$0xff]  ;;  %v56_v17 = vld [vmem:[%s1006_s1 + $0xa0] sm:$0xff]  ;;  %185 = vmatpush.msra.mxu3 %v63_v20  ;;  %v59_v28 = vld [vmem:[%s1006_s1 + $0xb8] sm:$0xff] }
   0x8   :  { %175 = vmatpush.msra.mxu2 %v106_v8  ;;  %v90_v13 = vld [vmem:[%s1006_s1 + $0x1b0] sm:$0xff]  ;;  %126 = vmatpush.msra.mxu0 %v60_v9  ;;  %v88_v18 = vld [vmem:[%s1006_s1 + $0x1a0] sm:$0xff]  ;;  %v95_v29 = vld [vmem:[%s1006_s1 + $0x1d8] sm:$0xff] }
   0x9   :  { %146 = vmatpush.msra.mxu1 %v92_v10  ;;  %v102_v15 = vld [vmem:[%s1006_s1 + $0x210] sm:$0xff]  ;;  %v100_v19 = vld [vmem:[%s1006_s1 + $0x200] sm:$0xff]  ;;  %186 = vmatpush.msra.mxu3 %v61_v24  ;;  %v57_v32 = vld [vmem:[%s1006_s1 + $0xa8] sm:$0xff] }
   0xa   :  { %176 = vmatpush.msra.mxu2 %v104_v11  ;;  %127 = vmatpush.msra.mxu0 %v58_v12  ;;  %v54_v22 = vld [vmem:[%s1006_s1 + $0x90] sm:$0xff]  ;;  %v52_v26 = vld [vmem:[%s1006_s1 + $0x80] sm:$0xff]  ;;  %v93_v33 = vld [vmem:[%s1006_s1 + $0x1c8] sm:$0xff] }
   0xb   :  { %147 = vmatpush.msra.mxu1 %v90_v13  ;;  %v86_v23 = vld [vmem:[%s1006_s1 + $0x190] sm:$0xff]  ;;  %v84_v27 = vld [vmem:[%s1006_s1 + $0x180] sm:$0xff]  ;;  %187 = vmatpush.msra.mxu3 %v59_v28  ;;  %v55_v36 = vld [vmem:[%s1006_s1 + $0x98] sm:$0xff] }
   0xc   :  { %177 = vmatpush.msra.mxu2 %v102_v15  ;;  %128 = vmatpush.msra.mxu0 %v56_v17  ;;  %v50_v30 = vld [vmem:[%s1006_s1 + $0x70] sm:$0xff]  ;;  %v48_v34 = vld [vmem:[%s1006_s1 + $0x60] sm:$0xff]  ;;  %v91_v37 = vld [vmem:[%s1006_s1 + $0x1b8] sm:$0xff] }
   0xd   :  { %148 = vmatpush.msra.mxu1 %v88_v18  ;;  %v82_v31 = vld [vmem:[%s1006_s1 + $0x170] sm:$0xff]  ;;  %v80_v35 = vld [vmem:[%s1006_s1 + $0x160] sm:$0xff]  ;;  %188 = vmatpush.msra.mxu3 %v57_v32  ;;  %v53_v40 = vld [vmem:[%s1006_s1 + $0x88] sm:$0xff] }
   0xe   :  { %178 = vmatpush.msra.mxu2 %v100_v19  ;;  %129 = vmatpush.msra.mxu0 %v54_v22  ;;  %v46_v38 = vld [vmem:[%s1006_s1 + $0x50] sm:$0xff]  ;;  %v89_v41 = vld [vmem:[%s1006_s1 + $0x1a8] sm:$0xff]  ;;  %v44_v42 = vld [vmem:[%s1006_s1 + $0x40] sm:$0xff] }
   0xf   :  { %149 = vmatpush.msra.mxu1 %v86_v23  ;;  %v78_v39 = vld [vmem:[%s1006_s1 + $0x150] sm:$0xff]  ;;  %189 = vmatpush.msra.mxu3 %v55_v36  ;;  %v76_v43 = vld [vmem:[%s1006_s1 + $0x140] sm:$0xff]  ;;  %v87_v45 = vld [vmem:[%s1006_s1 + $0x198] sm:$0xff] }
  0x10   :  { %203 = vmatpush.msrb.mxu2 %v99_v21  ;;  %130 = vmatpush.msra.mxu0 %v52_v26  ;;  %v767_v44 = vld [vmem:[%s1005_s0 + $0x10] sm:$0xff]  ;;  %v51_v48 = vld [vmem:[%s1006_s1 + $0x78] sm:$0xff]  ;;  %v85_v49 = vld [vmem:[%s1006_s1 + $0x188] sm:$0xff] }
  0x11   :  { %150 = vmatpush.msra.mxu1 %v84_v27  ;;  %v42_v46 = vld [vmem:[%s1006_s1 + $0x30] sm:$0xff]  ;;  %190 = vmatpush.msra.mxu3 %v53_v40  ;;  %v40_v50 = vld [vmem:[%s1006_s1 + $0x20] sm:$0xff]  ;;  %v83_v52 = vld [vmem:[%s1006_s1 + $0x178] sm:$0xff] }
  0x12   :  { %204 = vmatpush.msrb.mxu2 %v97_v25  ;;  %131 = vmatpush.msra.mxu0 %v50_v30  ;;  %v74_v47 = vld [vmem:[%s1006_s1 + $0x130] sm:$0xff]  ;;  %v72_v51 = vld [vmem:[%s1006_s1 + $0x120] sm:$0xff]  ;;  %v49_v53 = vld [vmem:[%s1006_s1 + $0x68] sm:$0xff] }
  0x13   :  { %151 = vmatpush.msra.mxu1 %v82_v31  ;;  %534 = vmatmul.msk.f32.vlgmr.msra.gmra.mxu2 %vm112_vm1, %v767_v44  ;;  %v38_v54 = vld [vmem:[%s1006_s1 + $0x10] sm:$0xff]  ;;  %v47_v56 = vld [vmem:[%s1006_s1 + $0x58] sm:$0xff] }
  0x14   :  { %205 = vmatpush.msrb.mxu2 %v95_v29  ;;  %132 = vmatpush.msra.mxu0 %v48_v34  ;;  %v70_v55 = vld [vmem:[%s1006_s1 + $0x110] sm:$0xff] }
  0x15   :  { %152 = vmatpush.msra.mxu1 %v80_v35  ;;  %191 = vmatpush.msra.mxu3 %v51_v48 }
  0x16   :  { %206 = vmatpush.msrb.mxu2 %v93_v33  ;;  %133 = vmatpush.msra.mxu0 %v46_v38 }
  0x17   :  { %153 = vmatpush.msra.mxu1 %v78_v39 }
  0x18   :  { %207 = vmatpush.msrb.mxu2 %v91_v37  ;;  %134 = vmatpush.msra.mxu0 %v44_v42 }
  0x19   :  { %154 = vmatpush.msra.mxu1 %v76_v43 }
  0x1a   :  { %208 = vmatpush.msrb.mxu2 %v89_v41  ;;  %135 = vmatpush.msra.mxu0 %v42_v46 }
  0x1b   :  { %155 = vmatpush.msra.mxu1 %v74_v47 }
  0x1c   :  { %209 = vmatpush.msrb.mxu2 %v87_v45  ;;  %136 = vmatpush.msra.mxu0 %v40_v50 }
  0x1e   :  { %210 = vmatpush.msrb.mxu2 %v85_v49 }
  0x1f   :  { %14 = vsyncpa [#allocation3], 0  ;;  %156 = vmatpush.msra.mxu1 %v72_v51  ;;  %192 = vmatpush.msra.mxu3 %v49_v53  ;;  %v81_v57 = vld [vmem:[%s1006_s1 + $0x168] sm:$0xff]  ;;  %v36_v58 = vld [vmem:[%s1006_s1] sm:$0xff]  ;;  %vm251_vm2 = vcmask 261120   ;;  %vm305_vm8 = vcmask 1040384  }
  0x20   :  { %211 = vmatpush.msrb.mxu2 %v83_v52  ;;  %137 = vmatpush.msra.mxu0 %v38_v54  ;;  %v68_v59 = vld [vmem:[%s1006_s1 + $0x100] sm:$0xff]  ;;  %v34_v61 = vld [vmem:[%s1005_s0 + $0x8] sm:$0xff]  ;;  %v79_v62 = vld [vmem:[%s1006_s1 + $0x158] sm:$0xff] }
  0x21   :  { %v33_v60 = vld [vmem:[%s1005_s0] sm:$0xff]  ;;  %157 = vmatpush.msra.mxu1 %v70_v55  ;;  %193 = vmatpush.msra.mxu3 %v47_v56  ;;  %v45_v63 = vld [vmem:[%s1006_s1 + $0x48] sm:$0xff]  ;;  %v111_v0 = vld [vmem:[%s1006_s1 + $0x258] sm:$0xf] }
  0x22   :  { %212 = vmatpush.msrb.mxu2 %v81_v57  ;;  %138 = vmatpush.msra.mxu0 %v36_v58  ;;  %v77_v1 = vld [vmem:[%s1006_s1 + $0x148] sm:$0xff]  ;;  %v43_v2 = vld [vmem:[%s1006_s1 + $0x38] sm:$0xff]  ;;  %v371_v58 = vld [vmem:[%s1009_s4 + $0x70] sm:$0xff] }
  0x23   :  { %158 = vmatpush.msra.mxu1 %v68_v59  ;;  %139 = vmatmul.f32.vlgmr.msra.gmra.mxu0 %v33_v60  ;;  %v109_v3 = vld [vmem:[%s1006_s1 + $0x248] sm:$0xff]  ;;  %v75_v4 = vld [vmem:[%s1006_s1 + $0x138] sm:$0xff] }
  0x24   :  { %159 = vmatmul.f32.vlgmr.msra.gmra.mxu1 %v34_v61  ;;  %213 = vmatpush.msrb.mxu2 %v79_v62  ;;  %v41_v5 = vld [vmem:[%s1006_s1 + $0x28] sm:$0xff]  ;;  %v107_v6 = vld [vmem:[%s1006_s1 + $0x238] sm:$0xff]  ;;  %v369_v62 = vld [vmem:[%s1009_s4 + $0x60] sm:$0xff] }
  0x25   :  { %194 = vmatpush.msra.mxu3 %v45_v63  ;;  %535 = vmatpush.msk.msrb.mxu0 %vm116_vm0, %v111_v0  ;;  %v73_v7 = vld [vmem:[%s1006_s1 + $0x128] sm:$0xff]  ;;  %v39_v8 = vld [vmem:[%s1006_s1 + $0x18] sm:$0xff] }
  0x26   :  { %214 = vmatpush.msrb.mxu2 %v77_v1  ;;  %v105_v9 = vld [vmem:[%s1006_s1 + $0x228] sm:$0xff]  ;;  %v71_v10 = vld [vmem:[%s1006_s1 + $0x118] sm:$0xff] }
  0x27   :  { %195 = vmatpush.msra.mxu3 %v43_v2  ;;  %234 = vmatpush.msrb.mxu0 %v109_v3  ;;  %v37_v11 = vld [vmem:[%s1006_s1 + $0x8] sm:$0xff]  ;;  %v103_v12 = vld [vmem:[%s1006_s1 + $0x218] sm:$0xff]  ;;  %v367_v3 = vld [vmem:[%s1009_s4 + $0x50] sm:$0xff] }
  0x28   :  { %215 = vmatpush.msrb.mxu2 %v75_v4  ;;  %v69_v13 = vld [vmem:[%s1006_s1 + $0x108] sm:$0xff]  ;;  %v372_v56 = vld [vmem:[%s1009_s4 + $0x78] sm:$0xff] }
  0x29   :  { %196 = vmatpush.msra.mxu3 %v41_v5  ;;  %235 = vmatpush.msrb.mxu0 %v107_v6  ;;  %v101_v14 = vld [vmem:[%s1006_s1 + $0x208] sm:$0xff]  ;;  %v368_v1 = vld [vmem:[%s1009_s4 + $0x58] sm:$0xff]  ;;  %v365_v6 = vld [vmem:[%s1009_s4 + $0x40] sm:$0xff] }
  0x2a   :  { %216 = vmatpush.msrb.mxu2 %v73_v7  ;;  %380 = vmatpush.msrb.mxu1 %v372_v56  ;;  %v366_v5 = vld [vmem:[%s1009_s4 + $0x48] sm:$0xff]  ;;  %v364_v7 = vld [vmem:[%s1009_s4 + $0x38] sm:$0xff] }
  0x2b   :  { %197 = vmatpush.msra.mxu3 %v39_v8  ;;  %236 = vmatpush.msrb.mxu0 %v105_v9  ;;  %v376_v8 = vld [vmem:[%s1009_s4 + $0x98] sm:$0xff] }
  0x2c   :  { %217 = vmatpush.msrb.mxu2 %v71_v10  ;;  %381 = vmatpush.msrb.mxu1 %v371_v58  ;;  %v375_v10 = vld [vmem:[%s1009_s4 + $0x90] sm:$0xff] }
  0x2d   :  { %198 = vmatpush.msra.mxu3 %v37_v11  ;;  %237 = vmatpush.msrb.mxu0 %v103_v12  ;;  %v363_v11 = vld [vmem:[%s1009_s4 + $0x30] sm:$0xff]  ;;  %v374_v12 = vld [vmem:[%s1009_s4 + $0x88] sm:$0xff] }
  0x2e   :  { %218 = vmatpush.msrb.mxu2 %v69_v13  ;;  %199 = vmatmul.f32.vlgmr.msra.gmra.mxu3 %v33_v60  ;;  %v370_v60 = vld [vmem:[%s1009_s4 + $0x68] sm:$0xff] }
  0x2f   :  { %219 = vmatmul.f32.vlgmr.msrb.gmra.mxu2 %v34_v61  ;;  %238 = vmatpush.msrb.mxu0 %v101_v14  ;;  %v362_v14 = vld [vmem:[%s1009_s4 + $0x28] sm:$0xff] }
  0x30   :  { %536 = vmatmul.msk.f32.vlgmr.msrb.gmra.mxu0 %vm112_vm1, %v767_v44  ;;  %382 = vmatpush.msrb.mxu1 %v370_v60 }
  0x31   :  { %412 = vmatpush.msrb.mxu3 %v376_v8 }
  0x32   :  { %383 = vmatpush.msrb.mxu1 %v369_v62 }
  0x33   :  { %413 = vmatpush.msrb.mxu3 %v375_v10 }
  0x34   :  { %384 = vmatpush.msrb.mxu1 %v368_v1 }
  0x35   :  { %414 = vmatpush.msrb.mxu3 %v374_v12 }
  0x36   :  { %385 = vmatpush.msrb.mxu1 %v367_v3 }
  0x38   :  { %386 = vmatpush.msrb.mxu1 %v366_v5 }
  0x3a   :  { %387 = vmatpush.msrb.mxu1 %v365_v6 }
  0x3c   :  { %388 = vmatpush.msrb.mxu1 %v364_v7 }
  0x3e   :  { %389 = vmatpush.msrb.mxu1 %v363_v11 }
  0x40   :  { %390 = vmatpush.msrb.mxu1 %v362_v14 }
  0x96   :  { %v180_v17 = vpop.f32.mrf.mxu2 }
  0xa0   :  { %v140_v15 = vpop.f32.mrf.mxu0 }
  0xa1   :  { %v160_v16 = vpop.f32.mrf.mxu1 }
  0xa2   :  { %v161_v18 = vadd.f32 %v160_v16, %v140_v15  ;;  %v373_v15 = vld [vmem:[%s1009_s4 + $0x80] sm:$0xff] }
  0xa3   :  { %415 = vmatpush.msrb.mxu3 %v373_v15 }
  0xa4   :  { %v181_v19 = vadd.f32 %v180_v17, %v161_v18  ;;  %v361_v18 = vld [vmem:[%s1009_s4 + $0x20] sm:$0xff] }
  0xa5   :  { %391 = vmatpush.msrb.mxu1 %v361_v18 }
  0xa6   :  { %v245_v20 = vrot.slane %v181_v19, 4 }
  0xa8   :  { %v246_v21 = vadd.f32 %v245_v20, %v181_v19  ;;  %v360_v20 = vld [vmem:[%s1009_s4 + $0x18] sm:$0xff] }
  0xa9   :  { %392 = vmatpush.msrb.mxu1 %v360_v20 }
  0xaa   :  { %v247_v22 = vrot.slane %v246_v21, 2 }
  0xac   :  { %v248_v23 = vadd.f32 %v247_v22, %v246_v21 }
  0xad   :  { %v240_v29 = vpop.f32.mrf.mxu0 }
  0xae   :  { %v249_v24 = vrot.slane %v248_v23, 1 }
  0xb0   :  { %v250_v25 = vadd.f32 %v249_v24, %v248_v23  ;;  %v359_v23 = vld [vmem:[%s1009_s4 + $0x10] sm:$0xff] }
  0xb1   :  { %v200_v26 = vpop.f32.mrf.mxu3  ;;  %393 = vmatpush.msrb.mxu1 %v359_v23 }
  0xb2   :  { %v259_v27 = vmul.f32 0.125, %v250_v25  ;;  %v220_v28 = vpop.f32.mrf.mxu2  ;;  %v358_v25 = vld [vmem:[%s1009_s4 + $0x8] sm:$0xff] }
  0xb3   :  { %v221_v30 = vadd.f32 %v220_v28, %v200_v26  ;;  %v357_v28 = vld [vmem:[%s1009_s4] sm:$0xff]  ;;  %394 = vmatpush.msrb.mxu1 %v358_v25 }
  0xb4   :  { %v876_v31 = vsub.f32 %v181_v19, %v259_v27 }
  0xb5   :  { %v241_v32 = vadd.f32 %v240_v29, %v221_v30  ;;  %v243_v30 = vld [vmem:[%s1007_s2] sm:$0x3]  ;;  %395 = vmatpush.msrb.mxu1 %v357_v28  ;;  %v487_v28 = vld [vmem:[%s1012_s7 + $0x48] sm:$0xff] }
  0xb6   :  { %v263_v33 = vmul.f32 %v876_v31, %v876_v31  ;;  %501 = vmatpush.msra.mxu3 %v487_v28 }
  0xb7   :  { %v252_v34 = vsel %vm251_vm2, %v241_v32, 0.0 }
  0xb8   :  { %v265_v35 = vrot.slane %v263_v33, 4  ;;  %v253_v36 = vrot.slane %v252_v34, 4 }
  0xba   :  { %v266_v37 = vadd.f32 %v265_v35, %v263_v33  ;;  %v254_v38 = vadd.f32 %v253_v36, %v252_v34  ;;  %v244_v34 = vld [vmem:[%s1008_s3] sm:$0x3]  ;;  %s524_s3 = sshll.u32 %s1014_s9, 4  ;;  %s525_s3 = int_to_ptr.hbm [resolvable:$true] %s524_s3 }
  0xbc   :  { %v267_v39 = vrot.slane %v266_v37, 2  ;;  %v255_v40 = vrot.slane %v254_v38, 2 }
  0xbe   :  { %v268_v41 = vadd.f32 %v267_v39, %v266_v37  ;;  %v256_v42 = vadd.f32 %v255_v40, %v254_v38  ;;  %v318_v38 = vperm.slane %v244_v34, 1  ;;  %v317_v40 = vperm.slane %v244_v34, 0  ;;  %v483_v34 = vld [vmem:[%s1012_s7 + $0x28] sm:$0xff] }
  0xc0   :  { %v257_v43 = vrot.slane %v256_v42, 1  ;;  %v269_v44 = vrot.slane %v268_v41, 1 }
  0xc2   :  { %v258_v45 = vadd.f32 %v257_v43, %v256_v42  ;;  %v270_v47 = vadd.f32 %v269_v44, %v268_v41 }
  0xc4   :  { %v260_v46 = vmul.f32 0.125, %v258_v45  ;;  %v278_v50 = vmul.f32 0.125, %v270_v47 }
  0xc6   :  { %v881_v48 = vsub.f32 %v241_v32, %v260_v46  ;;  %v886_v53 = vadd.f32 1e-05, %v278_v50 }
  0xc8   :  { %v264_v49 = vmul.f32 %v881_v48, %v881_v48  ;;  %542 = vrsqrt.f32 %v886_v53  ;;  %vm288_vm7 = vweird.f32 %v886_v53 }
  0xca   :  { %v271_v51 = vsel %vm251_vm2, %v264_v49, 0.0 }
  0xcb   :  { %v272_v52 = vrot.slane %v271_v51, 4 }
  0xcd   :  { %v273_v54 = vadd.f32 %v272_v52, %v271_v51 }
  0xce   :  { %v543_v63 = vpop.eup %542 }
  0xcf   :  { %v274_v55 = vrot.slane %v273_v54, 2  ;;  %v283_v4 = vmul.f32 %v543_v63, %v886_v53  ;;  %vm289_vm4 = vweird.f32 %v543_v63 }
  0xd0   :  { %vm290_vm9 = vmor %vm288_vm7, %vm289_vm4 }
  0xd1   :  { %v275_v57 = vadd.f32 %v274_v55, %v273_v54  ;;  %v284_v9 = vmul.f32 %v543_v63, %v283_v4 }
  0xd3   :  { %v276_v59 = vrot.slane %v275_v57, 1  ;;  %v285_v16 = vmul.f32 0.5, %v284_v9 }
  0xd5   :  { %v277_v61 = vadd.f32 %v276_v59, %v275_v57  ;;  %v286_v21 = vsub.f32 1.5, %v285_v16 }
  0xd7   :  { %v279_v0 = vmul.f32 0.125, %v277_v61  ;;  %v287_v26 = vmul.f32 %v543_v63, %v286_v21 }
  0xd9   :  { %v281_v2 = vadd.f32 1e-05, %v279_v0  ;;  %v291_v33 = vsel %vm290_vm9, %v543_v63, %v287_v26 }
  0xdb   :  { %544 = vrsqrt.f32 %v281_v2  ;;  %vm298_vm5 = vweird.f32 %v281_v2 }
  0xe1   :  { %v545_v13 = vpop.eup %544 }
  0xe2   :  { %v293_v17 = vmul.f32 %v545_v13, %v281_v2  ;;  %vm299_vm3 = vweird.f32 %v545_v13 }
  0xe3   :  { %vm300_vm6 = vmor %vm298_vm5, %vm299_vm3  ;;  %vm422_vm3 = vcmask 654336  }
  0xe4   :  { %v294_v19 = vmul.f32 %v545_v13, %v293_v17 }
  0xe6   :  { %v295_v22 = vmul.f32 0.5, %v294_v19 }
  0xe8   :  { %v296_v24 = vsub.f32 1.5, %v295_v22 }
  0xea   :  { %v297_v27 = vmul.f32 %v545_v13, %v296_v24 }
  0xec   :  { %v301_v29 = vsel %vm300_vm6, %v545_v13, %v297_v27 }
  0xed   :  { %v304_v32 = vrot.slane %v301_v29, 7  ;;  %v486_v29 = vld [vmem:[%s1012_s7 + $0x40] sm:$0xff] }
  0xee   :  { %502 = vmatpush.msra.mxu3 %v486_v29 }
  0xef   :  { %v306_v35 = vsel %vm305_vm8, %v291_v33, %v304_v32  ;;  %v484_v32 = vld [vmem:[%s1012_s7 + $0x30] sm:$0xff] }
  0xf0   :  { %v308_v36 = vmul.f32 %v306_v35, %v243_v30  ;;  %v485_v30 = vld [vmem:[%s1012_s7 + $0x38] sm:$0xff] }
  0xf1   :  { %503 = vmatpush.msra.mxu3 %v485_v30 }
  0xf2   :  { %v311_v37 = vperm.slane %v308_v36, 1  ;;  %v310_v39 = vperm.slane %v308_v36, 0  ;;  %v482_v36 = vld [vmem:[%s1012_s7 + $0x20] sm:$0xff] }
  0xf3   :  { %504 = vmatpush.msra.mxu3 %v484_v32 }
  0xf4   :  { %v315_v41 = vmul.f32 %v311_v37, %v881_v48  ;;  %v314_v42 = vmul.f32 %v310_v39, %v876_v31 }
  0xf5   :  { %505 = vmatpush.msra.mxu3 %v483_v34 }
  0xf6   :  { %v322_v43 = vadd.f32 %v318_v38, %v315_v41  ;;  %v321_v44 = vadd.f32 %v317_v40, %v314_v42  ;;  %v481_v38 = vld [vmem:[%s1012_s7 + $0x18] sm:$0xff]  ;;  %v480_v40 = vld [vmem:[%s1012_s7 + $0x10] sm:$0xff]  ;;  %v479_v42 = vld [vmem:[%s1012_s7 + $0x8] sm:$0xff] }
  0xf7   :  { %506 = vmatpush.msra.mxu3 %v482_v36 }
  0xf8   :  { %v324_v45 = vand.u32 2147483647, %v322_v43  ;;  %v323_v46 = vand.u32 2147483647, %v321_v44 }
  0xf9   :  { %507 = vmatpush.msra.mxu3 %v481_v38 }
  0xfa   :  { %v326_v47 = vadd.f32 1.0, %v324_v45  ;;  %v325_v49 = vadd.f32 1.0, %v323_v46  ;;  %v478_v45 = vld [vmem:[%s1012_s7] sm:$0xff]  ;;  %s580_s7 = smov [#allocation2]  }
  0xfb   :  { %508 = vmatpush.msra.mxu3 %v480_v40  ;;  %s522_s0 = sshll.u32 %s580_s7, 4  ;;  %s523_s0 = int_to_ptr.vmem [resolvable:$true] %s522_s0 }
  0xfc   :  { %546 = vrcp.f32 %v326_v47  ;;  %v352_v56 = vand.u32 2147483648, %v326_v47  ;;  %v338_v57 = vand.u32 2147483648, %v325_v49  ;;  %v350_v48 = vand.u32 2147483647, %v326_v47 }
  0xfd   :  { %548 = vrcp.f32 %v325_v49  ;;  %v336_v59 = vand.u32 2147483647, %v325_v49  ;;  %vm346_vm12 = vweird.f32 %v326_v47  ;;  %vm332_vm13 = vweird.f32 %v325_v49  ;;  %509 = vmatpush.msra.mxu3 %v479_v42 }
  0xfe   :  { %v353_v62 = vor.u32 1.1754944e-38, %v352_v56  ;;  %v339_v63 = vor.u32 1.1754944e-38, %v338_v57  ;;  %vm351_vm0 = vcmp.eq.f32.partialorder %v350_v48, 8.507059e+37 }
  0xff   :  { %vm337_vm1 = vcmp.eq.f32.partialorder %v336_v59, 8.507059e+37  ;;  %510 = vmatpush.msra.mxu3 %v478_v45 }
 0x102   :  { %v547_v50 = vpop.eup %546 }
 0x103   :  { %v549_v51 = vpop.eup %548  ;;  %v342_v52 = vmul.f32 %v547_v50, %v326_v47  ;;  %vm347_vm10 = vweird.f32 %v547_v50 }
 0x104   :  { %v328_v53 = vmul.f32 %v549_v51, %v325_v49  ;;  %vm333_vm11 = vweird.f32 %v549_v51  ;;  %vm348_vm14 = vmor %vm346_vm12, %vm347_vm10  ;;  %vm515_vm10 = vcmask 162816  }
 0x105   :  { %v343_v54 = vsub.f32 1.0, %v342_v52  ;;  %vm334_vm15 = vmor %vm332_vm13, %vm333_vm11 }
 0x106   :  { %v329_v55 = vsub.f32 1.0, %v328_v53 }
 0x107   :  { %v344_v58 = vmul.f32 %v547_v50, %v343_v54 }
 0x108   :  { %v330_v31 = vmul.f32 %v549_v51, %v329_v55 }
 0x109   :  { %v345_v60 = vadd.f32 %v547_v50, %v344_v58 }
 0x10a   :  { %v331_v61 = vadd.f32 %v549_v51, %v330_v31 }
 0x10b   :  { %v349_v0 = vsel %vm348_vm14, %v547_v50, %v345_v60  ;;  %v540_v50 = vld [vmem:[%s1011_s6] ss:$0 sm:$0xff] }
 0x10c   :  { %v335_v1 = vsel %vm334_vm15, %v549_v51, %v331_v61  ;;  %v354_v2 = vsel %vm351_vm0, %v353_v62, %v349_v0  ;;  %v541_v0 = vld [vmem:[%s1013_s8] ss:$0 sm:$0xff] }
 0x10d   :  { %v340_v3 = vsel %vm337_vm1, %v339_v63, %v335_v1  ;;  %v356_v4 = vmul.f32 %v354_v2, %v322_v43  ;;  %v420_v43 = vld [vmem:[%s1010_s5] sm:$0x1] }
 0x10e   :  { %v355_v5 = vmul.f32 %v340_v3, %v321_v44 }
 0x10f   :  { %537 = vmatmul.msk.f32.vlgmr.msrb.gmra.mxu3 %vm251_vm2, %v356_v4 }
 0x110   :  { %396 = vmatmul.f32.vlgmr.msrb.gmra.mxu1 %v355_v5 }
 0x18d   :  { %v397_v6 = vpop.f32.mrf.mxu1 }
 0x192   :  { %v417_v7 = vpop.f32.mrf.mxu3 }
 0x193   :  { %v418_v8 = vadd.f32 %v417_v7, %v397_v6 }
 0x195   :  { %v423_v9 = vsel %vm422_vm3, %v418_v8, 0.0 }
 0x196   :  { %v424_v10 = vrot.slane %v423_v9, 4 }
 0x198   :  { %v425_v11 = vadd.f32 %v424_v10, %v423_v9 }
 0x19a   :  { %v426_v12 = vrot.slane %v425_v11, 2 }
 0x19c   :  { %v427_v13 = vadd.f32 %v426_v12, %v425_v11 }
 0x19e   :  { %v428_v14 = vrot.slane %v427_v13, 1 }
 0x1a0   :  { %v429_v15 = vadd.f32 %v428_v14, %v427_v13 }
 0x1a2   :  { %v430_v16 = vmul.f32 0.125, %v429_v15 }
 0x1a4   :  { %v431_v17 = vsub.f32 %v418_v8, %v430_v16 }
 0x1a6   :  { %v432_v18 = vmul.f32 %v431_v17, %v431_v17 }
 0x1a8   :  { %v433_v19 = vsel %vm422_vm3, %v432_v18, 0.0 }
 0x1a9   :  { %v434_v20 = vrot.slane %v433_v19, 4 }
 0x1ab   :  { %v435_v21 = vadd.f32 %v434_v20, %v433_v19 }
 0x1ad   :  { %v436_v22 = vrot.slane %v435_v21, 2 }
 0x1af   :  { %v437_v23 = vadd.f32 %v436_v22, %v435_v21 }
 0x1b1   :  { %v438_v24 = vrot.slane %v437_v23, 1 }
 0x1b3   :  { %v439_v25 = vadd.f32 %v438_v24, %v437_v23 }
 0x1b5   :  { %v440_v26 = vmul.f32 0.125, %v439_v25 }
 0x1b7   :  { %v441_v27 = vadd.f32 1e-05, %v440_v26 }
 0x1b9   :  { %550 = vrsqrt.f32 %v441_v27  ;;  %vm448_vm4 = vweird.f32 %v441_v27 }
 0x1bf   :  { %v551_v33 = vpop.eup %550 }
 0x1c0   :  { %v443_v35 = vmul.f32 %v551_v33, %v441_v27  ;;  %vm449_vm2 = vweird.f32 %v551_v33 }
 0x1c1   :  { %vm450_vm5 = vmor %vm448_vm4, %vm449_vm2 }
 0x1c2   :  { %v444_v37 = vmul.f32 %v551_v33, %v443_v35 }
 0x1c4   :  { %v445_v39 = vmul.f32 0.5, %v444_v37 }
 0x1c6   :  { %v446_v41 = vsub.f32 1.5, %v445_v39 }
 0x1c8   :  { %v447_v44 = vmul.f32 %v551_v33, %v446_v41 }
 0x1ca   :  { %v451_v46 = vsel %vm450_vm5, %v551_v33, %v447_v44 }
 0x1cb   :  { %v452_v47 = vmul.f32 %v451_v46, %v420_v43 }
 0x1cd   :  { %v454_v49 = vperm.slane %v452_v47, 0 }
 0x1cf   :  { %v456_v51 = vmul.f32 %v454_v49, %v431_v17 }
 0x1d1   :  { %v460_v52 = vadd.f32 %v540_v50, %v456_v51 }
 0x1d3   :  { %v461_v53 = vand.u32 2147483647, %v460_v52 }
 0x1d5   :  { %v462_v54 = vadd.f32 1.0, %v461_v53 }
 0x1d7   :  { %552 = vrcp.f32 %v462_v54  ;;  %v474_v58 = vand.u32 2147483648, %v462_v54  ;;  %v472_v31 = vand.u32 2147483647, %v462_v54  ;;  %vm468_vm7 = vweird.f32 %v462_v54 }
 0x1d9   :  { %v475_v60 = vor.u32 1.1754944e-38, %v474_v58  ;;  %vm473_vm9 = vcmp.eq.f32.partialorder %v472_v31, 8.507059e+37 }
 0x1dd   :  { %v553_v55 = vpop.eup %552 }
 0x1de   :  { %v464_v56 = vmul.f32 %v553_v55, %v462_v54  ;;  %vm469_vm6 = vweird.f32 %v553_v55 }
 0x1df   :  { %vm470_vm8 = vmor %vm468_vm7, %vm469_vm6 }
 0x1e0   :  { %v465_v57 = vsub.f32 1.0, %v464_v56 }
 0x1e2   :  { %v466_v48 = vmul.f32 %v553_v55, %v465_v57 }
 0x1e4   :  { %v467_v59 = vadd.f32 %v553_v55, %v466_v48 }
 0x1e6   :  { %v471_v61 = vsel %vm470_vm8, %v553_v55, %v467_v59 }
 0x1e7   :  { %v476_v62 = vsel %vm473_vm9, %v475_v60, %v471_v61 }
 0x1e8   :  { %v477_v63 = vmul.f32 %v476_v62, %v460_v52 }
 0x1ea   :  { %538 = vmatmul.msk.f32.vlgmr.msra.gmra.mxu3 %vm422_vm3, %v477_v63 }
 0x26d   :  { %v512_v1 = vpop.f32.mrf.mxu3 }
 0x26e   :  { %v513_v2 = vadd.f32 %v541_v0, %v512_v1 }
 0x270   :  { %516 = vst.msk [vmem:[#allocation2] sm:$0xff] %vm515_vm10, %v513_v2 }
 0x271   :  { %527 = dma.vmem_to_hbm [thread:$0]  %s523_s0, 128, %s525_s3, [#allocation3]  }
 0x272   :  { %578 = dma.done.wait [#allocation3], 128  }
 0x273   :  { %579 = vsyncadd [#allocation3], 4294967168 }
 0x274   :  { %532 = vsyncpa [#allocation3], 1 }

</bundles_post_ra>
